<compile_context>
chip_gen: v5e
topology: v5e:2x2
jax: 0.10.0
libtpu: 0.0.40
codegen_flags: <defaults>
</compile_context>

<pallas_src>
import jax
import jax.numpy as jnp
from jax.experimental import pallas as pl
from jax.experimental.pallas import tpu as pltpu

EPS = 1e-5

# Logical (PyTorch) hidden widths; P1/P2 are the lane-padded kernel widths for
# layers 1 and 2 (layer-3 output stays at its logical width of 10).
H1, H2, H3 = 200, 100, 10
P1, P2 = 256, 128


def _bn_relu(h, gamma, beta):
    """Training-mode BatchNorm1d + ReLU with the affine fused into one mul+add."""
    mean = jnp.mean(h, axis=0, keepdims=True)
    centered = h - mean
    var = jnp.mean(centered * centered, axis=0, keepdims=True)   # biased variance
    scale = gamma * jax.lax.rsqrt(var + EPS)                     # (1, N)  EUP rsqrt
    shift = beta - mean * scale                                  # (1, N)
    return jnp.maximum(h * scale + shift, 0.0)


def mlp_kernel(x_ref, w1_ref, w2_ref, w3_ref, aux_ref, out_ref):
    # aux layout, shape (8, P1) f32:
    #   row 0/1: gamma1/beta1 (:H1)   row 2/3: gamma2/beta2 (:H2)
    #   row 4/5: gamma3/beta3 (:H3)   row 6: w4 (:H3)   row 7: b4 at col 0
    x = x_ref[...]                                                     # (B, F) f32

    # Linear biases b1/b2/b3 are omitted: they are cancelled by BN mean subtraction.
    # bf16 weights are upcast in-register (cheap VPU cast); DMA savings stay intact.
    w1 = w1_ref[...].astype(jnp.float32)                               # (F, P1)
    h = jnp.dot(x, w1, preferred_element_type=jnp.float32)             # (B, P1)
    h = _bn_relu(h, aux_ref[0:1, :], aux_ref[1:2, :])

    w2 = w2_ref[...].astype(jnp.float32)                               # (P1, P2)
    h = jnp.dot(h, w2, preferred_element_type=jnp.float32)             # (B, P2)
    h = _bn_relu(h, aux_ref[2:3, 0:P2], aux_ref[3:4, 0:P2])

    # Layer 3 is intentionally NOT N-padded: (P2, 10) weight, (B, 10) activations
    # live in a masked-lane vreg; only the final HBM store needs to be lane-dense.
    w3 = w3_ref[...].astype(jnp.float32)                               # (P2, H3)
    h = jnp.dot(h, w3, preferred_element_type=jnp.float32)             # (B, H3)
    g3 = aux_ref[4:5, :][:, :H3]
    b3 = aux_ref[5:6, :][:, :H3]
    h = _bn_relu(h, g3, b3)

    # Final Linear(10 -> 1): an N=1 MXU matmul is wasteful; do it on the VPU/XLU:
    # elementwise multiply by the w4 row, reduce over lanes, add b4.
    w4_row = aux_ref[6:7, :][:, :H3]                                   # (1, H3)
    b4 = aux_ref[7:8, 0:1]                                             # (1, 1)
    res = jnp.sum(h * w4_row, axis=-1, keepdims=True) + b4             # (B, 1)

    # Lane-dense store: one vreg at B=8 (unmasked vst); the wrapper slices column 0.
    # TODO(synk): for large B, pack results along lanes instead of broadcasting
    # (128x HBM-write amplification otherwise).
    out_ref[...] = jnp.broadcast_to(res, out_ref.shape)


@jax.jit
def neural_net_forward(x, w1p, w2p, w3p, aux):
    """Whole-batch forward in one gridless pallas_call (everything fits in VMEM).

    BatchNorm needs full-batch statistics, so the batch is not tiled.
    # TODO(synk): large batch / v7x -> batch-tiled grid, two-pass BN, parallel axis,
    # and pltpu.CompilerParams(vmem_limit_bytes=...) above the scoped default.
    """
    B = x.shape[0]
    vmem = pl.BlockSpec(memory_space=pltpu.MemorySpace.VMEM)

    flops = 2 * B * (x.shape[1] * P1 + P1 * P2 + P2 * H3 + H3)
    bytes_accessed = (sum(int(a.size) * a.dtype.itemsize
                          for a in (x, w1p, w2p, w3p, aux)) + B * 128 * 4)

    slab = pl.pallas_call(
        mlp_kernel,
        out_shape=jax.ShapeDtypeStruct((B, 128), jnp.float32),
        in_specs=[vmem] * 5,
        out_specs=vmem,
        cost_estimate=pl.CostEstimate(
            flops=flops,
            transcendentals=P1 + P2 + H3,     # one rsqrt per feature
            bytes_accessed=bytes_accessed,
        ),
    )(x, w1p, w2p, w3p, aux)
    # NOTE: in a fused pipeline the consumer should take the lane-dense slab and do
    # the slice itself; we slice here only to match the nn.Module output signature.
    return slab[:, :1]                                                 # (B, 1)


def init_params(key, input_size):
    """PyTorch-default init: Linear W, b ~ U[-1/sqrt(fan_in), +1/sqrt(fan_in)];
    BatchNorm gamma=1, beta=0.  Weights stored as (in, out) so forward is x @ W + b."""
    dims = [(input_size, H1), (H1, H2), (H2, H3), (H3, 1)]
    params = []
    for i, (fan_in, fan_out) in enumerate(dims):
        key, kw, kb = jax.random.split(key, 3)
        bound = 1.0 / (fan_in ** 0.5)
        w = jax.random.uniform(kw, (fan_in, fan_out), jnp.float32, -bound, bound)
        b = jax.random.uniform(kb, (1, fan_out), jnp.float32, -bound, bound)
        params.extend([w, b])
        if i < 3:  # BatchNorm after the first three linears
            params.extend([jnp.ones((1, fan_out), jnp.float32),    # gamma
                           jnp.zeros((1, fan_out), jnp.float32)])  # beta
    return tuple(params)


def pack_params(params, input_size):
    """Pad layer-1/2 weight lane dims to multiples of 128 (layer-3 output left at 10),
    cast the three big weights to bf16, and pack all small vectors into one (8, 256)
    f32 slab.  b1/b2/b3 are intentionally NOT packed (cancelled by BN)."""
    (w1, _b1, g1, be1, w2, _b2, g2, be2, w3, _b3, g3, be3, w4, b4) = params
    w1p = jnp.zeros((input_size, P1), jnp.float32).at[:, :H1].set(w1).astype(jnp.bfloat16)
    w2p = jnp.zeros((P1, P2), jnp.float32).at[:H1, :H2].set(w2).astype(jnp.bfloat16)
    w3p = jnp.zeros((P2, H3), jnp.float32).at[:H2, :].set(w3).astype(jnp.bfloat16)

    aux = jnp.zeros((8, P1), jnp.float32)
    aux = aux.at[0, :H1].set(g1[0]).at[1, :H1].set(be1[0])
    aux = aux.at[2, :H2].set(g2[0]).at[3, :H2].set(be2[0])
    aux = aux.at[4, :H3].set(g3[0]).at[5, :H3].set(be3[0])
    aux = aux.at[6, :H3].set(w4[:, 0]).at[7, 0].set(b4[0, 0])

    # Padded gamma/beta/w4 lanes MUST be exactly zero: padded columns stay zero only
    # because gamma*rsqrt(eps)*0 + beta == 0 there.  Guard against future init changes.
    assert bool(jnp.all(aux[0:2, H1:] == 0.0)), "padded gamma1/beta1 lanes must be zero"
    assert bool(jnp.all(aux[2:4, H2:] == 0.0)), "padded gamma2/beta2 lanes must be zero"
    assert bool(jnp.all(aux[4:7, H3:] == 0.0)), "padded gamma3/beta3/w4 lanes must be zero"
    return w1p, w2p, w3p, aux


def reference_forward(x, params):
    """Pure-JAX reference WITH the linear biases (also checks BN bias-cancellation)."""
    (w1, b1, g1, be1, w2, b2, g2, be2, w3, b3, g3, be3, w4, b4) = params

    def bn_relu(h, g, be):
        m = jnp.mean(h, axis=0, keepdims=True)
        v = jnp.mean((h - m) ** 2, axis=0, keepdims=True)
        return jnp.maximum((h - m) / jnp.sqrt(v + EPS) * g + be, 0.0)

    h = bn_relu(x @ w1 + b1, g1, be1)
    h = bn_relu(h @ w2 + b2, g2, be2)
    h = bn_relu(h @ w3 + b3, g3, be3)
    return h @ w4 + b4


if __name__ == "__main__":
    key = jax.random.PRNGKey(0)
    key, kx, kp = jax.random.split(key, 3)

    BATCH = 8
    INPUT_SIZE = 32

    x = jax.random.normal(kx, (BATCH, INPUT_SIZE), jnp.float32)
    params = init_params(kp, INPUT_SIZE)
    w1p, w2p, w3p, aux = pack_params(params, INPUT_SIZE)

    out = neural_net_forward(x, w1p, w2p, w3p, aux)
    out = jax.block_until_ready(out)
    assert out.shape == (BATCH, 1), out.shape

    # Strict check: reference using the same bf16-rounded weights (upcast) WITH the
    # original f32 biases -> validates kernel math incl. the BN bias-cancellation.
    params_q = list(params)
    for idx in (0, 4, 8):  # w1, w2, w3
        params_q[idx] = params[idx].astype(jnp.bfloat16).astype(jnp.float32)
    ref_q = reference_forward(x, tuple(params_q))
    assert jnp.allclose(out, ref_q, atol=2e-4, rtol=2e-4), (out, ref_q)

    # Loose check vs. the original f32 weights: bounds the bf16 quantization drift.
    ref = reference_forward(x, params)
    assert jnp.allclose(out, ref, atol=1e-1, rtol=1e-1), (out, ref)

    print("KERNEL_OK")
</pallas_src>

<mosaic_0001>
module attributes {stable_mosaic.version = 11 : i64} {
  func.func @mlp_kernel(%arg0: memref<8x32xf32, #tpu.memory_space<vmem>>, %arg1: memref<32x256xbf16, #tpu.memory_space<vmem>>, %arg2: memref<256x128xbf16, #tpu.memory_space<vmem>>, %arg3: memref<128x10xbf16, #tpu.memory_space<vmem>>, %arg4: memref<8x256xf32, #tpu.memory_space<vmem>>, %arg5: memref<8x128xf32, #tpu.memory_space<vmem>>) attributes {dimension_semantics = [], scalar_prefetch = 0 : i64, scratch_operands = 0 : i64, tpu.core_type = #tpu.core_type<tc>} {
    %c0 = arith.constant 0 : index
    %c0_0 = arith.constant 0 : index
    %0 = vector.load %arg0[%c0, %c0_0] : memref<8x32xf32, #tpu.memory_space<vmem>>, vector<8x32xf32>
    %c0_1 = arith.constant 0 : index
    %c0_2 = arith.constant 0 : index
    %1 = vector.load %arg1[%c0_1, %c0_2] : memref<32x256xbf16, #tpu.memory_space<vmem>>, vector<32x256xbf16>
    %2 = arith.extf %1 : vector<32x256xbf16> to vector<32x256xf32>
    %cst = arith.constant dense<0.000000e+00> : vector<8x256xf32>
    %3 = tpu.matmul %0, %2, %cst {dimension_numbers = #tpu.dot_dimension_numbers<[1], [0], [0], [1], [0, 0, 1, 1], [], []>} : vector<8x32xf32>, vector<32x256xf32>, vector<8x256xf32> -> vector<8x256xf32>
    %c0_3 = arith.constant 0 : index
    %c0_4 = arith.constant 0 : index
    %4 = vector.load %arg4[%c0_3, %c0_4] : memref<8x256xf32, #tpu.memory_space<vmem>>, vector<1x256xf32>
    %c1 = arith.constant 1 : index
    %c0_5 = arith.constant 0 : index
    %5 = vector.load %arg4[%c1, %c0_5] : memref<8x256xf32, #tpu.memory_space<vmem>>, vector<1x256xf32>
    %cst_6 = arith.constant dense<0.000000e+00> : vector<256xf32>
    %6 = vector.multi_reduction <add>, %3, %cst_6 [0] : vector<8x256xf32> to vector<256xf32>
    %7 = vector.shape_cast %6 : vector<256xf32> to vector<1x256xf32>
    %cst_7 = arith.constant 8.000000e+00 : f32
    %8 = vector.broadcast %cst_7 : f32 to vector<1x256xf32>
    %9 = arith.divf %7, %8 : vector<1x256xf32>
    %10 = vector.broadcast %9 : vector<1x256xf32> to vector<8x256xf32>
    %11 = arith.subf %3, %10 : vector<8x256xf32>
    %12 = arith.mulf %11, %11 : vector<8x256xf32>
    %cst_8 = arith.constant dense<0.000000e+00> : vector<256xf32>
    %13 = vector.multi_reduction <add>, %12, %cst_8 [0] : vector<8x256xf32> to vector<256xf32>
    %14 = vector.shape_cast %13 : vector<256xf32> to vector<1x256xf32>
    %cst_9 = arith.constant 8.000000e+00 : f32
    %15 = vector.broadcast %cst_9 : f32 to vector<1x256xf32>
    %16 = arith.divf %14, %15 : vector<1x256xf32>
    %cst_10 = arith.constant 9.99999974E-6 : f32
    %17 = vector.broadcast %cst_10 : f32 to vector<1x256xf32>
    %18 = arith.addf %16, %17 : vector<1x256xf32>
    %19 = math.rsqrt %18 : vector<1x256xf32>
    %20 = arith.mulf %4, %19 : vector<1x256xf32>
    %21 = arith.mulf %9, %20 : vector<1x256xf32>
    %22 = arith.subf %5, %21 : vector<1x256xf32>
    %23 = vector.broadcast %20 : vector<1x256xf32> to vector<8x256xf32>
    %24 = arith.mulf %3, %23 : vector<8x256xf32>
    %25 = vector.broadcast %22 : vector<1x256xf32> to vector<8x256xf32>
    %26 = arith.addf %24, %25 : vector<8x256xf32>
    %cst_11 = arith.constant 0.000000e+00 : f32
    %27 = vector.broadcast %cst_11 : f32 to vector<8x256xf32>
    %28 = arith.maximumf %26, %27 : vector<8x256xf32>
    %c0_12 = arith.constant 0 : index
    %c0_13 = arith.constant 0 : index
    %29 = vector.load %arg2[%c0_12, %c0_13] : memref<256x128xbf16, #tpu.memory_space<vmem>>, vector<256x128xbf16>
    %30 = arith.extf %29 : vector<256x128xbf16> to vector<256x128xf32>
    %cst_14 = arith.constant dense<0.000000e+00> : vector<8x128xf32>
    %31 = tpu.matmul %28, %30, %cst_14 {dimension_numbers = #tpu.dot_dimension_numbers<[1], [0], [0], [1], [0, 0, 1, 1], [], []>} : vector<8x256xf32>, vector<256x128xf32>, vector<8x128xf32> -> vector<8x128xf32>
    %c2 = arith.constant 2 : index
    %c0_15 = arith.constant 0 : index
    %32 = vector.load %arg4[%c2, %c0_15] : memref<8x256xf32, #tpu.memory_space<vmem>>, vector<1x128xf32>
    %c3 = arith.constant 3 : index
    %c0_16 = arith.constant 0 : index
    %33 = vector.load %arg4[%c3, %c0_16] : memref<8x256xf32, #tpu.memory_space<vmem>>, vector<1x128xf32>
    %cst_17 = arith.constant dense<0.000000e+00> : vector<128xf32>
    %34 = vector.multi_reduction <add>, %31, %cst_17 [0] : vector<8x128xf32> to vector<128xf32>
    %35 = vector.shape_cast %34 : vector<128xf32> to vector<1x128xf32>
    %cst_18 = arith.constant 8.000000e+00 : f32
    %36 = vector.broadcast %cst_18 : f32 to vector<1x128xf32>
    %37 = arith.divf %35, %36 : vector<1x128xf32>
    %38 = vector.broadcast %37 : vector<1x128xf32> to vector<8x128xf32>
    %39 = arith.subf %31, %38 : vector<8x128xf32>
    %40 = arith.mulf %39, %39 : vector<8x128xf32>
    %cst_19 = arith.constant dense<0.000000e+00> : vector<128xf32>
    %41 = vector.multi_reduction <add>, %40, %cst_19 [0] : vector<8x128xf32> to vector<128xf32>
    %42 = vector.shape_cast %41 : vector<128xf32> to vector<1x128xf32>
    %cst_20 = arith.constant 8.000000e+00 : f32
    %43 = vector.broadcast %cst_20 : f32 to vector<1x128xf32>
    %44 = arith.divf %42, %43 : vector<1x128xf32>
    %cst_21 = arith.constant 9.99999974E-6 : f32
    %45 = vector.broadcast %cst_21 : f32 to vector<1x128xf32>
    %46 = arith.addf %44, %45 : vector<1x128xf32>
    %47 = math.rsqrt %46 : vector<1x128xf32>
    %48 = arith.mulf %32, %47 : vector<1x128xf32>
    %49 = arith.mulf %37, %48 : vector<1x128xf32>
    %50 = arith.subf %33, %49 : vector<1x128xf32>
    %51 = vector.broadcast %48 : vector<1x128xf32> to vector<8x128xf32>
    %52 = arith.mulf %31, %51 : vector<8x128xf32>
    %53 = vector.broadcast %50 : vector<1x128xf32> to vector<8x128xf32>
    %54 = arith.addf %52, %53 : vector<8x128xf32>
    %cst_22 = arith.constant 0.000000e+00 : f32
    %55 = vector.broadcast %cst_22 : f32 to vector<8x128xf32>
    %56 = arith.maximumf %54, %55 : vector<8x128xf32>
    %c0_23 = arith.constant 0 : index
    %c0_24 = arith.constant 0 : index
    %57 = vector.load %arg3[%c0_23, %c0_24] : memref<128x10xbf16, #tpu.memory_space<vmem>>, vector<128x10xbf16>
    %58 = arith.extf %57 : vector<128x10xbf16> to vector<128x10xf32>
    %cst_25 = arith.constant dense<0.000000e+00> : vector<8x10xf32>
    %59 = tpu.matmul %56, %58, %cst_25 {dimension_numbers = #tpu.dot_dimension_numbers<[1], [0], [0], [1], [0, 0, 1, 1], [], []>} : vector<8x128xf32>, vector<128x10xf32>, vector<8x10xf32> -> vector<8x10xf32>
    %c4 = arith.constant 4 : index
    %c0_26 = arith.constant 0 : index
    %60 = vector.load %arg4[%c4, %c0_26] : memref<8x256xf32, #tpu.memory_space<vmem>>, vector<1x256xf32>
    %61 = vector.extract_strided_slice %60 {offsets = [0, 0], sizes = [1, 10], strides = [1, 1]} : vector<1x256xf32> to vector<1x10xf32>
    %c5 = arith.constant 5 : index
    %c0_27 = arith.constant 0 : index
    %62 = vector.load %arg4[%c5, %c0_27] : memref<8x256xf32, #tpu.memory_space<vmem>>, vector<1x256xf32>
    %63 = vector.extract_strided_slice %62 {offsets = [0, 0], sizes = [1, 10], strides = [1, 1]} : vector<1x256xf32> to vector<1x10xf32>
    %cst_28 = arith.constant dense<0.000000e+00> : vector<10xf32>
    %64 = vector.multi_reduction <add>, %59, %cst_28 [0] : vector<8x10xf32> to vector<10xf32>
    %65 = vector.shape_cast %64 : vector<10xf32> to vector<1x10xf32>
    %cst_29 = arith.constant 8.000000e+00 : f32
    %66 = vector.broadcast %cst_29 : f32 to vector<1x10xf32>
    %67 = arith.divf %65, %66 : vector<1x10xf32>
    %68 = vector.broadcast %67 : vector<1x10xf32> to vector<8x10xf32>
    %69 = arith.subf %59, %68 : vector<8x10xf32>
    %70 = arith.mulf %69, %69 : vector<8x10xf32>
    %cst_30 = arith.constant dense<0.000000e+00> : vector<10xf32>
    %71 = vector.multi_reduction <add>, %70, %cst_30 [0] : vector<8x10xf32> to vector<10xf32>
    %72 = vector.shape_cast %71 : vector<10xf32> to vector<1x10xf32>
    %cst_31 = arith.constant 8.000000e+00 : f32
    %73 = vector.broadcast %cst_31 : f32 to vector<1x10xf32>
    %74 = arith.divf %72, %73 : vector<1x10xf32>
    %cst_32 = arith.constant 9.99999974E-6 : f32
    %75 = vector.broadcast %cst_32 : f32 to vector<1x10xf32>
    %76 = arith.addf %74, %75 : vector<1x10xf32>
    %77 = math.rsqrt %76 : vector<1x10xf32>
    %78 = arith.mulf %61, %77 : vector<1x10xf32>
    %79 = arith.mulf %67, %78 : vector<1x10xf32>
    %80 = arith.subf %63, %79 : vector<1x10xf32>
    %81 = vector.broadcast %78 : vector<1x10xf32> to vector<8x10xf32>
    %82 = arith.mulf %59, %81 : vector<8x10xf32>
    %83 = vector.broadcast %80 : vector<1x10xf32> to vector<8x10xf32>
    %84 = arith.addf %82, %83 : vector<8x10xf32>
    %cst_33 = arith.constant 0.000000e+00 : f32
    %85 = vector.broadcast %cst_33 : f32 to vector<8x10xf32>
    %86 = arith.maximumf %84, %85 : vector<8x10xf32>
    %c6 = arith.constant 6 : index
    %c0_34 = arith.constant 0 : index
    %87 = vector.load %arg4[%c6, %c0_34] : memref<8x256xf32, #tpu.memory_space<vmem>>, vector<1x256xf32>
    %88 = vector.extract_strided_slice %87 {offsets = [0, 0], sizes = [1, 10], strides = [1, 1]} : vector<1x256xf32> to vector<1x10xf32>
    %c7 = arith.constant 7 : index
    %c0_35 = arith.constant 0 : index
    %89 = vector.load %arg4[%c7, %c0_35] : memref<8x256xf32, #tpu.memory_space<vmem>>, vector<1x1xf32>
    %90 = vector.broadcast %88 : vector<1x10xf32> to vector<8x10xf32>
    %91 = arith.mulf %86, %90 : vector<8x10xf32>
    %cst_36 = arith.constant dense<0.000000e+00> : vector<8xf32>
    %92 = vector.multi_reduction <add>, %91, %cst_36 [1] : vector<8x10xf32> to vector<8xf32>
    %93 = vector.shape_cast %92 : vector<8xf32> to vector<8x1xf32>
    %94 = vector.broadcast %89 : vector<1x1xf32> to vector<8x1xf32>
    %95 = arith.addf %93, %94 : vector<8x1xf32>
    %96 = vector.shape_cast %95 : vector<8x1xf32> to vector<8x1xf32>
    %97 = vector.broadcast %96 : vector<8x1xf32> to vector<8x128xf32>
    %c0_37 = arith.constant 0 : index
    %c0_38 = arith.constant 0 : index
    %98 = vector.load %arg5[%c0_37, %c0_38] : memref<8x128xf32, #tpu.memory_space<vmem>>, vector<8x128xf32>
    tpu.vector_store %arg5[%c0_37, %c0_38], %97 {strides = array<i32>} : memref<8x128xf32, #tpu.memory_space<vmem>>, vector<8x128xf32>,
    return
  }
}

</mosaic_0001>

<bundles_post_ra>
// kernel: neural_net_forward.1
= control target key start
LH: loop header
LB: loop body
LE: loop exit
PB: predicated region body
PF: predicated region fallthrough
CT: control target
= control target key end

     0   :  { %10 = vsyncpa [#allocation3], 0  ;;  %s613_s21 = smov [#allocation2]   ;;  %s614_s23 = smov 64   ;;  %s755_s0 = inlined_call_operand.vmem [shape: f32[8,32], index: 0, kind: input, shape index: {}]   ;;  %s756_s1 = inlined_call_operand.vmem [shape: bf16[32,256], index: 1, kind: input, shape index: {}]   ;;  %s757_s2 = inlined_call_operand.hbm [shape: bf16[256,128], index: 2, kind: input, shape index: {}]   ;;  %s758_s3 = inlined_call_operand.vmem [shape: bf16[128,10], index: 3, kind: input, shape index: {}]   ;;  %s759_s4 = inlined_call_operand.vmem [shape: f32[8,256], index: 4, kind: input, shape index: {}]   ;;  %s760_s5 = inlined_call_operand.vmem [shape: f32[8,128], index: 5, kind: output, shape index: {}]  }
   0x1   :  { %s19_s20 = sshll.u32 %s757_s2, 4  ;;  %s21_s22 = sshll.u32 %s613_s21, 4  ;;  %s20_s20 = int_to_ptr.hbm [resolvable:$true] %s19_s20  ;;  %s22_s22 = int_to_ptr.vmem [resolvable:$true] %s21_s22 }
   0x2   :  { %s615_s24 = smov 4  }
   0x3   :  { %27 = dma.hbm_to_vmem [thread:$0]  %s20_s20, 2048, %s22_s22, [#allocation3], %s614_s23, %s614_s23, %s615_s24  }
   0x4   :  { %611 = dma.done.wait [#allocation3], 2048  }
   0x5   :  { %612 = vsyncadd [#allocation3], 4294965248  ;;  %v40_v0 = vld [vmem:[%s756_s1 + $0x18] sm:$0xff]  ;;  %v39_v1 = vld [vmem:[%s756_s1 + $0x10] sm:$0xff]  ;;  %vm49_vm0 = vcmask 261120   ;;  %v616_v13 = vmov 8.0  }
   0x6   :  { %v38_v2 = vld [vmem:[%s756_s1 + $0x8] sm:$0xff]  ;;  %v47_v3 = vunpack.c.l.bf16 %v40_v0  ;;  %v45_v4 = vunpack.c.l.bf16 %v39_v1  ;;  %v37_v5 = vld [vmem:[%s756_s1] sm:$0xff]  ;;  %v48_v9 = vunpack.c.h.bf16 %v40_v0  ;;  %v46_v10 = vunpack.c.h.bf16 %v39_v1  ;;  %v555_v34 = vld [vmem:[#allocation2 + $0x38] sm:$0xff]  }
   0x7   :  { %v43_v6 = vunpack.c.l.bf16 %v38_v2  ;;  %v41_v7 = vunpack.c.l.bf16 %v37_v5  ;;  %v36_v8 = vld [vmem:[%s755_s0] sm:$0xff]  ;;  %v44_v11 = vunpack.c.h.bf16 %v38_v2  ;;  %v42_v12 = vunpack.c.h.bf16 %v37_v5  ;;  %v563_v35 = vld [vmem:[#allocation2 + $0x78] sm:$0xff]   ;;  %v554_v44 = vld [vmem:[#allocation2 + $0x30] sm:$0xff]  }
   0x8   :  { %65 = vmatpush.msra.mxu1 %v47_v3  ;;  %577 = vrcp.f32 %v616_v13  ;;  %v484_v36 = vunpack.c.h.bf16 %v555_v34  ;;  %v516_v37 = vunpack.c.h.bf16 %v563_v35  ;;  %v483_v40 = vunpack.c.l.bf16 %v555_v34  ;;  %v562_v45 = vld [vmem:[#allocation2 + $0x70] sm:$0xff]   ;;  %v553_v54 = vld [vmem:[#allocation2 + $0x28] sm:$0xff]   ;;  %v552_v0 = vld [vmem:[#allocation2 + $0x20] sm:$0xff]  }
   0x9   :  { %v515_v41 = vunpack.c.l.bf16 %v563_v35  ;;  %v480_v46 = vunpack.c.h.bf16 %v554_v44  ;;  %v512_v47 = vunpack.c.h.bf16 %v562_v45  ;;  %v479_v50 = vunpack.c.l.bf16 %v554_v44  ;;  %v561_v55 = vld [vmem:[#allocation2 + $0x68] sm:$0xff]   ;;  %v560_v1 = vld [vmem:[#allocation2 + $0x60] sm:$0xff]  }
   0xa   :  { %66 = vmatpush.msra.mxu1 %v45_v4  ;;  %252 = vmatpush.msra.mxu2 %v484_v36  ;;  %v511_v51 = vunpack.c.l.bf16 %v562_v45  ;;  %v476_v56 = vunpack.c.h.bf16 %v553_v54  ;;  %v508_v57 = vunpack.c.h.bf16 %v561_v55  ;;  %v475_v60 = vunpack.c.l.bf16 %v553_v54  ;;  %v454_v35 = vld [vmem:[#allocation2] sm:$0xff]  }
   0xb   :  { %272 = vmatpush.msra.mxu3 %v516_v37  ;;  %v507_v61 = vunpack.c.l.bf16 %v561_v55  ;;  %v472_v2 = vunpack.c.h.bf16 %v552_v0  ;;  %v504_v3 = vunpack.c.h.bf16 %v560_v1  ;;  %v556_v36 = vld [vmem:[#allocation2 + $0x40] sm:$0xff]   ;;  %v455_v44 = vunpack.c.l.bf16 %v454_v35 }
   0xc   :  { %67 = vmatpush.msra.mxu1 %v43_v6  ;;  %253 = vmatpush.msra.mxu2 %v483_v40  ;;  %v471_v6 = vunpack.c.l.bf16 %v552_v0  ;;  %v487_v45 = vunpack.c.l.bf16 %v556_v36  ;;  %vm160_vm7 = vcmask 1040384   ;;  %vm383_vm12 = vcmask 80896  }
   0xd   :  { %273 = vmatpush.msra.mxu3 %v515_v41 }
   0xe   :  { %68 = vmatpush.msra.mxu1 %v41_v7  ;;  %v578_v14 = vpop.eup %577  ;;  %254 = vmatpush.msra.mxu2 %v480_v46  ;;  %v503_v7 = vunpack.c.l.bf16 %v560_v1 }
   0xf   :  { %447 = vmatmul.msk.f32.vlgmr.msra.gmra.mxu1 %vm49_vm0, %v36_v8  ;;  %v109_v15 = vmul.f32 8.0, %v578_v14  ;;  %vm113_vm1 = vweird.f32 %v578_v14  ;;  %274 = vmatpush.msra.mxu3 %v512_v47 }
  0x10   :  { %85 = vmatpush.msrb.mxu1 %v48_v9  ;;  %255 = vmatpush.msra.mxu2 %v479_v50 }
  0x11   :  { %v110_v16 = vsub.f32 1.0, %v109_v15  ;;  %275 = vmatpush.msra.mxu3 %v511_v51 }
  0x12   :  { %86 = vmatpush.msrb.mxu1 %v46_v10  ;;  %256 = vmatpush.msra.mxu2 %v476_v56  ;;  %v551_v10 = vld [vmem:[#allocation2 + $0x18] sm:$0xff]  }
  0x13   :  { %v111_v19 = vmul.f32 %v578_v14, %v110_v16  ;;  %276 = vmatpush.msra.mxu3 %v508_v57  ;;  %v467_v16 = vunpack.c.l.bf16 %v551_v10 }
  0x14   :  { %87 = vmatpush.msrb.mxu1 %v44_v11  ;;  %257 = vmatpush.msra.mxu2 %v475_v60  ;;  %v559_v11 = vld [vmem:[#allocation2 + $0x58] sm:$0xff]  }
  0x15   :  { %v112_v22 = vadd.f32 %v578_v14, %v111_v19  ;;  %277 = vmatpush.msra.mxu3 %v507_v61  ;;  %v500_v13 = vunpack.c.h.bf16 %v559_v11 }
  0x16   :  { %88 = vmatpush.msrb.mxu1 %v42_v12  ;;  %258 = vmatpush.msra.mxu2 %v472_v2  ;;  %v468_v12 = vunpack.c.h.bf16 %v551_v10 }
  0x17   :  { %448 = vmatmul.msk.f32.vlgmr.msrb.gmra.mxu1 %vm49_vm0, %v36_v8  ;;  %v673_v27 = vsel %vm113_vm1, %v578_v14, %v112_v22  ;;  %278 = vmatpush.msra.mxu3 %v504_v3  ;;  %v449_v3 = vld [vmem:[%s759_s4 + $0x1] ss:$8 sm:$0x3] }
  0x18   :  { %259 = vmatpush.msra.mxu2 %v471_v6 }
  0x19   :  { %279 = vmatpush.msra.mxu3 %v503_v7 }
  0x1a   :  { %260 = vmatpush.msra.mxu2 %v468_v12 }
  0x1b   :  { %280 = vmatpush.msra.mxu3 %v500_v13 }
  0x1c   :  { %261 = vmatpush.msra.mxu2 %v467_v16  ;;  %v568_v16 = vld [vmem:[%s758_s3 + $0x28] sm:$0xff]  }
  0x8c   :  { %v666_v17 = vpop.f32.mrf.mxu1 }
  0x8d   :  { %v96_v18 = vrot.slane %v666_v17, 4 }
  0x8f   :  { %v97_v20 = vadd.f32 %v96_v18, %v666_v17  ;;  %v499_v18 = vunpack.c.l.bf16 %v559_v11 }
  0x91   :  { %v98_v21 = vrot.slane %v97_v20, 2  ;;  %281 = vmatpush.msra.mxu3 %v499_v18 }
  0x93   :  { %v99_v23 = vadd.f32 %v98_v21, %v97_v20  ;;  %v550_v20 = vld [vmem:[#allocation2 + $0x10] sm:$0xff]  }
  0x94   :  { %v670_v24 = vpop.f32.mrf.mxu1  ;;  %v558_v21 = vld [vmem:[#allocation2 + $0x50] sm:$0xff]   ;;  %v464_v22 = vunpack.c.h.bf16 %v550_v20 }
  0x95   :  { %v100_v25 = vrot.slane %v99_v23, 1  ;;  %v102_v26 = vrot.slane %v670_v24, 4 }
  0x96   :  { %262 = vmatpush.msra.mxu2 %v464_v22 }
  0x97   :  { %v101_v28 = vadd.f32 %v100_v25, %v99_v23  ;;  %v103_v29 = vadd.f32 %v102_v26, %v670_v24  ;;  %v496_v23 = vunpack.c.h.bf16 %v558_v21  ;;  %v463_v26 = vunpack.c.l.bf16 %v550_v20  ;;  %v567_v20 = vld [vmem:[%s758_s3 + $0x20] sm:$0xff]  }
  0x98   :  { %v536_v22 = vunpack.c.h.bf16 %v567_v20 }
  0x99   :  { %v677_v30 = vmul.f32 %v673_v27, %v101_v28  ;;  %v104_v31 = vrot.slane %v103_v29, 2  ;;  %282 = vmatpush.msra.mxu3 %v496_v23  ;;  %v495_v28 = vunpack.c.l.bf16 %v558_v21  ;;  %263 = vmatpush.msra.mxu2 %v463_v26  ;;  %v539_v21 = vunpack.c.l.bf16 %v568_v16  ;;  %v566_v23 = vld [vmem:[%s758_s3 + $0x18] sm:$0xff]  }
  0x9a   :  { %v532_v26 = vunpack.c.h.bf16 %v566_v23 }
  0x9b   :  { %v117_v32 = vsub.f32 %v666_v17, %v677_v30  ;;  %v105_v33 = vadd.f32 %v104_v31, %v103_v29  ;;  %v549_v29 = vld [vmem:[#allocation2 + $0x8] sm:$0xff]   ;;  %283 = vmatpush.msra.mxu3 %v495_v28  ;;  %v565_v28 = vld [vmem:[%s758_s3 + $0x10] sm:$0xff]  }
  0x9c   :  { %v557_v31 = vld [vmem:[#allocation2 + $0x48] sm:$0xff]   ;;  %v459_v37 = vunpack.c.l.bf16 %v549_v29 }
  0x9d   :  { %v119_v38 = vmul.f32 %v117_v32, %v117_v32  ;;  %v106_v39 = vrot.slane %v105_v33, 1  ;;  %v492_v34 = vunpack.c.h.bf16 %v557_v31 }
  0x9f   :  { %v121_v42 = vrot.slane %v119_v38, 4  ;;  %v107_v43 = vadd.f32 %v106_v39, %v105_v33  ;;  %v460_v33 = vunpack.c.h.bf16 %v549_v29  ;;  %284 = vmatpush.msra.mxu3 %v492_v34  ;;  %v531_v29 = vunpack.c.l.bf16 %v566_v23 }
  0xa1   :  { %v122_v48 = vadd.f32 %v121_v42, %v119_v38  ;;  %v682_v49 = vmul.f32 %v673_v27, %v107_v43  ;;  %v491_v38 = vunpack.c.l.bf16 %v557_v31  ;;  %264 = vmatpush.msra.mxu2 %v460_v33  ;;  %v456_v42 = vunpack.c.h.bf16 %v454_v35 }
  0xa2   :  { %v488_v43 = vunpack.c.h.bf16 %v556_v36  ;;  %v528_v31 = vunpack.c.h.bf16 %v565_v28  ;;  %v527_v33 = vunpack.c.l.bf16 %v565_v28 }
  0xa3   :  { %v123_v52 = vrot.slane %v122_v48, 2  ;;  %v118_v53 = vsub.f32 %v670_v24, %v682_v49  ;;  %265 = vmatpush.msra.mxu2 %v459_v37  ;;  %285 = vmatpush.msra.mxu3 %v491_v38  ;;  %v518_v38 = vld [vmem:[%s758_s3] sm:$0xff]  }
  0xa5   :  { %v124_v58 = vadd.f32 %v123_v52, %v122_v48  ;;  %v120_v59 = vmul.f32 %v118_v53, %v118_v53  ;;  %266 = vmatpush.msra.mxu2 %v456_v42  ;;  %286 = vmatpush.msra.mxu3 %v488_v43  ;;  %v519_v43 = vunpack.c.l.bf16 %v518_v38 }
  0xa7   :  { %v125_v62 = vrot.slane %v124_v58, 1  ;;  %v127_v63 = vrot.slane %v120_v59, 4  ;;  %267 = vmatpush.msra.mxu2 %v455_v44  ;;  %287 = vmatpush.msra.mxu3 %v487_v45 }
  0xa9   :  { %v126_v4 = vadd.f32 %v125_v62, %v124_v58  ;;  %v128_v5 = vadd.f32 %v127_v63, %v120_v59  ;;  %v93_v58 = vld [vmem:[%s759_s4] ss:$8 sm:$0x3] }
  0xab   :  { %v133_v8 = vmul.f32 %v126_v4, %v673_v27  ;;  %v129_v9 = vrot.slane %v128_v5, 2 }
  0xad   :  { %v687_v14 = vadd.f32 1e-05, %v133_v8  ;;  %v130_v15 = vadd.f32 %v129_v9, %v128_v5 }
  0xaf   :  { %579 = vrsqrt.f32 %v687_v14  ;;  %v131_v19 = vrot.slane %v130_v15, 1  ;;  %vm143_vm6 = vweird.f32 %v687_v14 }
  0xb1   :  { %v132_v25 = vadd.f32 %v131_v19, %v130_v15  ;;  %v540_v19 = vunpack.c.h.bf16 %v568_v16 }
  0xb3   :  { %v134_v32 = vmul.f32 %v132_v25, %v673_v27  ;;  %v535_v25 = vunpack.c.l.bf16 %v567_v20 }
  0xb5   :  { %v580_v39 = vpop.eup %579  ;;  %v136_v40 = vadd.f32 1e-05, %v134_v32  ;;  %v564_v32 = vld [vmem:[%s758_s3 + $0x8] sm:$0xff]  }
  0xb6   :  { %v138_v41 = vmul.f32 %v580_v39, %v687_v14  ;;  %vm144_vm3 = vweird.f32 %v580_v39  ;;  %v524_v36 = vunpack.c.h.bf16 %v564_v32 }
  0xb7   :  { %581 = vrsqrt.f32 %v136_v40  ;;  %vm153_vm4 = vweird.f32 %v136_v40  ;;  %vm145_vm8 = vmor %vm143_vm6, %vm144_vm3 }
  0xb8   :  { %v139_v46 = vmul.f32 %v580_v39, %v138_v41  ;;  %v520_v41 = vunpack.c.h.bf16 %v518_v38 }
  0xba   :  { %v140_v48 = vmul.f32 0.5, %v139_v46 }
  0xbc   :  { %v141_v52 = vsub.f32 1.5, %v140_v48 }
  0xbd   :  { %v582_v47 = vpop.eup %581 }
  0xbe   :  { %v148_v50 = vmul.f32 %v582_v47, %v136_v40  ;;  %vm154_vm2 = vweird.f32 %v582_v47  ;;  %v142_v55 = vmul.f32 %v580_v39, %v141_v52 }
  0xbf   :  { %vm155_vm5 = vmor %vm153_vm4, %vm154_vm2 }
  0xc0   :  { %v149_v51 = vmul.f32 %v582_v47, %v148_v50  ;;  %v146_v60 = vsel %vm145_vm8, %v580_v39, %v142_v55  ;;  %v523_v39 = vunpack.c.l.bf16 %v564_v32 }
  0xc2   :  { %v150_v53 = vmul.f32 0.5, %v149_v51 }
  0xc4   :  { %v151_v54 = vsub.f32 1.5, %v150_v53 }
  0xc6   :  { %v152_v56 = vmul.f32 %v582_v47, %v151_v54 }
  0xc8   :  { %v156_v57 = vsel %vm155_vm5, %v582_v47, %v152_v56 }
  0xc9   :  { %v159_v59 = vrot.slane %v156_v57, 7 }
  0xcb   :  { %v161_v61 = vsel %vm160_vm7, %v146_v60, %v159_v59 }
  0xcc   :  { %v163_v62 = vmul.f32 %v161_v61, %v93_v58 }
  0xce   :  { %v166_v63 = vperm.slane %v163_v62, 1  ;;  %v165_v0 = vperm.slane %v163_v62, 0 }
  0xd0   :  { %v170_v1 = vmul.f32 %v166_v63, %v682_v49  ;;  %v169_v4 = vmul.f32 %v165_v0, %v677_v30  ;;  %v178_v7 = vmul.f32 %v166_v63, %v670_v24  ;;  %v177_v8 = vmul.f32 %v165_v0, %v666_v17  ;;  %v570_v49 = vld [vmem:[%s758_s3 + $0x38] sm:$0xff]   ;;  %v569_v30 = vld [vmem:[%s758_s3 + $0x30] sm:$0xff]  }
  0xd1   :  { %v548_v15 = vunpack.c.h.bf16 %v570_v49  ;;  %v547_v24 = vunpack.c.l.bf16 %v570_v49  ;;  %v544_v17 = vunpack.c.h.bf16 %v569_v30  ;;  %v543_v18 = vunpack.c.l.bf16 %v569_v30 }
  0xd2   :  { %v173_v2 = vrot.slane %v170_v1, 7  ;;  %v292_v1 = vld [vmem:[%s759_s4 + $0x2] ss:$0 sm:$0xff] }
  0xd3   :  { %359 = vmatpush.msra.mxu0 %v548_v15 }
  0xd4   :  { %v174_v5 = vsel %vm160_vm7, %v169_v4, %v173_v2 }
  0xd5   :  { %v176_v6 = vsub.f32 %v449_v3, %v174_v5  ;;  %360 = vmatpush.msra.mxu0 %v547_v24  ;;  %v293_v5 = vld [vmem:[%s759_s4 + $0x3] ss:$0 sm:$0xff] }
  0xd7   :  { %v180_v9 = vperm.slane %v176_v6, 0  ;;  %v181_v10 = vperm.slane %v176_v6, 1  ;;  %361 = vmatpush.msra.mxu0 %v544_v17 }
  0xd9   :  { %v184_v11 = vadd.f32 %v180_v9, %v177_v8  ;;  %v185_v12 = vadd.f32 %v181_v10, %v178_v7  ;;  %362 = vmatpush.msra.mxu0 %v543_v18 }
  0xdb   :  { %v186_v13 = vmax.f32 %v184_v11, 0.0  ;;  %v187_v14 = vmax.f32 %v185_v12, 0.0  ;;  %363 = vmatpush.msra.mxu0 %v540_v19 }
  0xdd   :  { %268 = vmatmul.f32.vlgmr.msra.gmra.mxu2 %v186_v13  ;;  %288 = vmatmul.f32.vlgmr.msra.gmra.mxu3 %v187_v14 }
  0xde   :  { %364 = vmatpush.msra.mxu0 %v539_v21 }
  0xe0   :  { %365 = vmatpush.msra.mxu0 %v536_v22 }
  0xe2   :  { %366 = vmatpush.msra.mxu0 %v535_v25 }
  0xe4   :  { %367 = vmatpush.msra.mxu0 %v532_v26 }
  0xe6   :  { %368 = vmatpush.msra.mxu0 %v531_v29 }
  0xe8   :  { %369 = vmatpush.msra.mxu0 %v528_v31 }
  0xea   :  { %370 = vmatpush.msra.mxu0 %v527_v33 }
  0xec   :  { %371 = vmatpush.msra.mxu0 %v524_v36  ;;  %v450_v36 = vld [vmem:[%s759_s4 + $0x4] ss:$8 sm:$0x3] }
  0xee   :  { %372 = vmatpush.msra.mxu0 %v523_v39 }
  0xf0   :  { %373 = vmatpush.msra.mxu0 %v520_v41 }
  0xf2   :  { %374 = vmatpush.msra.mxu0 %v519_v43  ;;  %v452_v43 = vld [vmem:[%s759_s4 + $0x6] ss:$8 sm:$0x3] }
 0x160   :  { %v269_v34 = vpop.f32.mrf.mxu2  ;;  %v289_v35 = vpop.f32.mrf.mxu3 }
 0x161   :  { %v290_v37 = vadd.f32 %v289_v35, %v269_v34 }
 0x163   :  { %v294_v40 = vrot.slane %v290_v37, 4 }
 0x165   :  { %v295_v42 = vadd.f32 %v294_v40, %v290_v37 }
 0x167   :  { %v296_v44 = vrot.slane %v295_v42, 2 }
 0x169   :  { %v297_v45 = vadd.f32 %v296_v44, %v295_v42 }
 0x16b   :  { %v298_v46 = vrot.slane %v297_v45, 1 }
 0x16d   :  { %v299_v47 = vadd.f32 %v298_v46, %v297_v45 }
 0x16f   :  { %v300_v48 = vmul.f32 %v299_v47, %v673_v27  ;;  %v429_v47 = vperm.slane %v452_v43, 0 }
 0x171   :  { %v301_v50 = vsub.f32 %v290_v37, %v300_v48 }
 0x173   :  { %v302_v51 = vmul.f32 %v301_v50, %v301_v50 }
 0x175   :  { %v303_v52 = vrot.slane %v302_v51, 4 }
 0x177   :  { %v304_v53 = vadd.f32 %v303_v52, %v302_v51  ;;  %v617_v52 = vmov 0  }
 0x178   :  { %576 = vset.pattern.permute.xlu0 %v617_v52 }
 0x179   :  { %v305_v54 = vrot.slane %v304_v53, 2 }
 0x17b   :  { %v306_v55 = vadd.f32 %v305_v54, %v304_v53  ;;  %v427_v53 = vld [vmem:[%s759_s4 + $0x7] ss:$0 sm:$0xff] }
 0x17d   :  { %v307_v56 = vrot.slane %v306_v55, 1 }
 0x17f   :  { %v308_v57 = vadd.f32 %v307_v56, %v306_v55 }
 0x181   :  { %v309_v58 = vmul.f32 %v308_v57, %v673_v27 }
 0x183   :  { %v310_v59 = vadd.f32 1e-05, %v309_v58 }
 0x185   :  { %583 = vrsqrt.f32 %v310_v59  ;;  %vm317_vm10 = vweird.f32 %v310_v59 }
 0x18b   :  { %v584_v60 = vpop.eup %583 }
 0x18c   :  { %v312_v61 = vmul.f32 %v584_v60, %v310_v59  ;;  %vm318_vm9 = vweird.f32 %v584_v60 }
 0x18d   :  { %vm319_vm11 = vmor %vm317_vm10, %vm318_vm9 }
 0x18e   :  { %v313_v62 = vmul.f32 %v584_v60, %v312_v61 }
 0x190   :  { %v314_v63 = vmul.f32 0.5, %v313_v62 }
 0x192   :  { %v315_v0 = vsub.f32 1.5, %v314_v63 }
 0x194   :  { %v316_v2 = vmul.f32 %v584_v60, %v315_v0 }
 0x196   :  { %v320_v3 = vsel %vm319_vm11, %v584_v60, %v316_v2 }
 0x197   :  { %v321_v4 = vmul.f32 %v320_v3, %v292_v1 }
 0x199   :  { %v322_v6 = vmul.f32 %v321_v4, %v300_v48  ;;  %v324_v8 = vmul.f32 %v321_v4, %v290_v37 }
 0x19b   :  { %v323_v7 = vsub.f32 %v293_v5, %v322_v6 }
 0x19d   :  { %v325_v9 = vadd.f32 %v324_v8, %v323_v7 }
 0x19f   :  { %v326_v10 = vmax.f32 %v325_v9, 0.0 }
 0x1a1   :  { %375 = vmatmul.f32.vlgmr.msra.gmra.mxu0 %v326_v10 }
 0x21e   :  { %v376_v11 = vpop.f32.mrf.mxu0 }
 0x21f   :  { %v384_v12 = vsel %vm383_vm12, %v376_v11, 0.0 }
 0x220   :  { %v385_v13 = vrot.slane %v384_v12, 4 }
 0x222   :  { %v386_v14 = vadd.f32 %v385_v13, %v384_v12 }
 0x224   :  { %v387_v49 = vrot.slane %v386_v14, 2 }
 0x226   :  { %v388_v30 = vadd.f32 %v387_v49, %v386_v14 }
 0x228   :  { %v389_v15 = vrot.slane %v388_v30, 1 }
 0x22a   :  { %v390_v24 = vadd.f32 %v389_v15, %v388_v30 }
 0x22c   :  { %v391_v17 = vmul.f32 %v390_v24, %v673_v27 }
 0x22e   :  { %v392_v16 = vsub.f32 %v376_v11, %v391_v17 }
 0x230   :  { %v393_v18 = vmul.f32 %v392_v16, %v392_v16 }
 0x232   :  { %v394_v19 = vsel %vm383_vm12, %v393_v18, 0.0 }
 0x233   :  { %v395_v20 = vrot.slane %v394_v19, 4 }
 0x235   :  { %v396_v21 = vadd.f32 %v395_v20, %v394_v19 }
 0x237   :  { %v397_v22 = vrot.slane %v396_v21, 2 }
 0x239   :  { %v398_v23 = vadd.f32 %v397_v22, %v396_v21 }
 0x23b   :  { %v399_v25 = vrot.slane %v398_v23, 1 }
 0x23d   :  { %v400_v26 = vadd.f32 %v399_v25, %v398_v23 }
 0x23f   :  { %v401_v28 = vmul.f32 %v400_v26, %v673_v27  ;;  %v451_v27 = vld [vmem:[%s759_s4 + $0x5] ss:$8 sm:$0x3] }
 0x241   :  { %v402_v29 = vadd.f32 1e-05, %v401_v28 }
 0x243   :  { %585 = vrsqrt.f32 %v402_v29  ;;  %vm409_vm14 = vweird.f32 %v402_v29 }
 0x249   :  { %v586_v31 = vpop.eup %585 }
 0x24a   :  { %v404_v32 = vmul.f32 %v586_v31, %v402_v29  ;;  %vm410_vm13 = vweird.f32 %v586_v31 }
 0x24b   :  { %vm411_vm15 = vmor %vm409_vm14, %vm410_vm13 }
 0x24c   :  { %v405_v33 = vmul.f32 %v586_v31, %v404_v32 }
 0x24e   :  { %v406_v34 = vmul.f32 0.5, %v405_v33 }
 0x250   :  { %v407_v35 = vsub.f32 1.5, %v406_v34 }
 0x252   :  { %v408_v37 = vmul.f32 %v586_v31, %v407_v35 }
 0x254   :  { %v412_v38 = vsel %vm411_vm15, %v586_v31, %v408_v37 }
 0x255   :  { %v413_v39 = vmul.f32 %v450_v36, %v412_v38 }
 0x257   :  { %v414_v40 = vmul.f32 %v413_v39, %v391_v17  ;;  %v417_v41 = vperm.slane %v413_v39, 0 }
 0x259   :  { %v415_v42 = vsub.f32 %v451_v27, %v414_v40  ;;  %v419_v44 = vmul.f32 %v417_v41, %v376_v11 }
 0x25b   :  { %v421_v45 = vperm.slane %v415_v42, 0 }
 0x25d   :  { %v423_v46 = vadd.f32 %v421_v45, %v419_v44 }
 0x25f   :  { %v424_v48 = vmax.f32 %v423_v46, 0.0 }
 0x261   :  { %v431_v50 = vmul.f32 %v429_v47, %v424_v48 }
 0x263   :  { %v432_v51 = vsel %vm383_vm12, %v431_v50, 0.0 }
 0x264   :  { %433 = vadd.xlane.f32.xlu0 %v432_v51 }
 0x2d7   :  { %v434_v54 = vpop.xlane.xlu0 %433 }
 0x2d8   :  { %v435_v55 = vadd.f32 %v434_v54, %v427_v53 }
 0x2da   :  { %438 = vperm.xlu0 %576, %v435_v55  }
 0x34c   :  { %v439_v56 = vpop.permute.xlu0 %438 }
 0x34d   :  { %441 = vst [vmem:[%s760_s5] sm:$0xff] %v439_v56 }
 0x34e   :  { %446 = vsyncpa [#allocation3], 1 }

</bundles_post_ra>
